<compile_context>
chip_gen: v6e
topology: v6e:2x2x1
jax: 0.10.0
libtpu: 0.0.40
codegen_flags: <defaults>
</compile_context>

<pallas_src>
from functools import partial

import jax
import jax.numpy as jnp
from jax.experimental import pallas as pl
from jax.experimental.pallas import tpu as pltpu


def _round_up(x, m):
    return (x + m - 1) // m * m


def _vmem_capacity_bytes():
    """Per-core VMEM capacity; conservative (v7x) fallback if the query fails."""
    try:
        return int(pltpu.get_tpu_info().vmem_capacity_bytes)
    except Exception:
        return 64 << 20


_TILE_CANDIDATES = (1024, 768, 512, 384, 256, 128, 64, 32, 16, 8)


def _plan_resident(n_rows, h_pad, itemsize, budget_bytes, min_tile):
    """Row tile for the weight-resident path; None if W can't stay VMEM-resident."""
    fixed = (h_pad * h_pad + h_pad) * itemsize            # single-buffered W + bias
    per_row = h_pad * (4 * itemsize + 2 * 4)              # 2 x-bufs + 2 out-bufs + f32 temps
    if fixed + min_tile * per_row > budget_bytes:
        return None                                       # -> K-tiled fallback
    tile_n = min_tile
    for cand in _TILE_CANDIDATES:
        if cand < min_tile or cand > max(n_rows, min_tile):
            continue
        if fixed + cand * per_row <= budget_bytes:
            tile_n = cand
            break
    # v7x has 2 TensorCores: make sure the "parallel" row axis has >= 2 steps.
    while tile_n > min_tile and pl.cdiv(n_rows, tile_n) < 2:
        new_tile = max(min_tile, _round_up(tile_n // 2, min_tile))
        if new_tile == tile_n:
            break
        tile_n = new_tile
    return tile_n


def _plan_tiled(n_rows, h_pad, itemsize, budget_bytes, min_tile):
    """Tiles for the K-tiled fallback (weight streamed, f32 accumulator)."""
    tile_h = 128
    for th in (512, 256, 128):
        if h_pad % th == 0:
            tile_h = th
            break
    tile_n = min_tile
    for cand in _TILE_CANDIDATES:
        if cand < min_tile or cand > max(n_rows, min_tile):
            continue
        need = ((2 * cand * tile_h)            # x (matmul) bufs
                + (2 * tile_h * tile_h)        # W bufs
                + (2 * tile_h)                 # bias bufs
                + (4 * cand * tile_h)          # x-residual + out bufs
                ) * itemsize + 3 * cand * tile_h * 4   # f32 acc + temps
        if need <= budget_bytes:
            tile_n = cand
            break
    return tile_n, tile_h


def residual_linear_kernel(gamma_ref, x_ref, w_ref, b_ref, o_ref):
    # gamma_ref: (1,) scalar in SMEM
    # x_ref:     (TILE_N, H) token tile in VMEM (pipelined)
    # w_ref:     (H, H) resident weight in VMEM (y = x @ w), single-buffered
    # b_ref:     (1, H) resident bias in VMEM, single-buffered
    x = x_ref[...]
    y = jnp.dot(x, w_ref[...], preferred_element_type=jnp.float32)
    y = y + b_ref[...].astype(jnp.float32)
    out = x.astype(jnp.float32) + gamma_ref[0].astype(jnp.float32) * y
    o_ref[...] = out.astype(o_ref.dtype)


def residual_linear_tiled_kernel(gamma_ref, xk_ref, w_ref, b_ref, xr_ref, o_ref, acc_ref):
    # K-tiled fallback: grid = (row tiles, out-col tiles, reduction tiles).
    k = pl.program_id(2)

    @pl.when(k == 0)
    def _init():
        acc_ref[...] = jnp.zeros_like(acc_ref)

    acc_ref[...] += jnp.dot(xk_ref[...], w_ref[...], preferred_element_type=jnp.float32)

    @pl.when(k == pl.num_programs(2) - 1)
    def _epilogue():
        y = acc_ref[...] + b_ref[...].astype(jnp.float32)
        out = xr_ref[...].astype(jnp.float32) + gamma_ref[0].astype(jnp.float32) * y
        o_ref[...] = out.astype(o_ref.dtype)


@partial(jax.jit, static_argnames=("force_tiled",))
def residual_forward(x, w, b, gamma, *, force_tiled=False):
    """x: (B, S, H); w: (H, H) with y = x @ w; b: (H,); gamma: scalar."""
    B, S, H = x.shape
    N = B * S
    dtype = x.dtype
    itemsize = jnp.dtype(dtype).itemsize
    min_tile = max(8, 32 // itemsize)            # (8,128) f32, (16,128) bf16, (32,128) int8

    capacity = _vmem_capacity_bytes()
    budget = (capacity * 3) // 4                 # ~48 MiB on v7x, ~96 MiB on v5e/v6e

    H_pad = max(_round_up(H, 128), 128)          # lane-dense hidden dim
    gamma1 = jnp.asarray(gamma, jnp.float32).reshape(1)

    tile_n = None if force_tiled else _plan_resident(N, H_pad, itemsize, budget, min_tile)
    use_resident = tile_n is not None
    if not use_resident:
        tile_n, tile_h = _plan_tiled(N, H_pad, itemsize, budget, min_tile)
    N_pad = _round_up(max(N, min_tile), tile_n)

    # Only materialize pad / slice passes when the shapes actually need them.
    x2 = x.reshape(N, H)
    padded = (N_pad != N) or (H_pad != H)
    if padded:
        x2 = jnp.pad(x2, ((0, N_pad - N), (0, H_pad - H)))
    w2 = w.astype(dtype)
    b2 = b.astype(dtype)
    if H_pad != H:
        w2 = jnp.pad(w2, ((0, H_pad - H), (0, H_pad - H)))
        b2 = jnp.pad(b2, (0, H_pad - H))
    b2 = b2.reshape(1, H_pad)

    cost = pl.CostEstimate(
        flops=2 * N_pad * H_pad * H_pad,
        transcendentals=0,
        bytes_accessed=(2 * N_pad * H_pad + H_pad * H_pad + H_pad) * itemsize,
    )

    if use_resident:
        # Weight-resident path: W/bias single-buffered, row tiles pipelined.
        vmem_need = ((H_pad * H_pad + H_pad) * itemsize
                     + tile_n * H_pad * (4 * itemsize + 2 * 4))
        vmem_limit = int(min(capacity - (8 << 20), max(32 << 20, vmem_need + (4 << 20))))
        grid = (N_pad // tile_n,)
        out = pl.pallas_call(
            residual_linear_kernel,
            out_shape=jax.ShapeDtypeStruct((N_pad, H_pad), dtype),
            grid=grid,
            in_specs=[
                pl.BlockSpec(memory_space=pltpu.MemorySpace.SMEM),           # gamma
                pl.BlockSpec((tile_n, H_pad), lambda i: (i, 0)),             # x tile
                pl.BlockSpec((H_pad, H_pad), lambda i: (0, 0),
                             pipeline_mode=pl.Buffered(1)),                  # W (resident)
                pl.BlockSpec((1, H_pad), lambda i: (0, 0),
                             pipeline_mode=pl.Buffered(1)),                  # bias (resident)
            ],
            out_specs=pl.BlockSpec((tile_n, H_pad), lambda i: (i, 0)),
            input_output_aliases={1: 0} if padded else {},                   # reuse padded-x buffer
            compiler_params=pltpu.CompilerParams(
                dimension_semantics=("parallel",),
                vmem_limit_bytes=vmem_limit,
            ),
            cost_estimate=cost,
        )(gamma1, x2, w2, b2)
    else:
        # K-tiled fallback: weight streamed in (tile_h, tile_h) blocks, f32 accumulator.
        vmem_need = (((2 + 4) * tile_n * tile_h + 2 * tile_h * tile_h + 2 * tile_h) * itemsize
                     + 3 * tile_n * tile_h * 4)
        vmem_limit = int(min(capacity - (8 << 20), max(32 << 20, vmem_need + (4 << 20))))
        grid = (N_pad // tile_n, H_pad // tile_h, H_pad // tile_h)
        out = pl.pallas_call(
            residual_linear_tiled_kernel,
            out_shape=jax.ShapeDtypeStruct((N_pad, H_pad), dtype),
            grid=grid,
            in_specs=[
                pl.BlockSpec(memory_space=pltpu.MemorySpace.SMEM),                 # gamma
                pl.BlockSpec((tile_n, tile_h), lambda i, j, k: (i, k)),            # x (matmul)
                pl.BlockSpec((tile_h, tile_h), lambda i, j, k: (k, j)),            # W block
                pl.BlockSpec((1, tile_h), lambda i, j, k: (0, j)),                 # bias block
                pl.BlockSpec((tile_n, tile_h), lambda i, j, k: (i, j)),            # x (residual)
            ],
            out_specs=pl.BlockSpec((tile_n, tile_h), lambda i, j, k: (i, j)),
            scratch_shapes=[pltpu.VMEM((tile_n, tile_h), jnp.float32)],
            compiler_params=pltpu.CompilerParams(
                dimension_semantics=("parallel", "parallel", "arbitrary"),
                vmem_limit_bytes=vmem_limit,
            ),
            cost_estimate=cost,
        )(gamma1, x2, w2, b2, x2)

    if padded:
        out = out[:N, :H]
    return out.reshape(B, S, H)


if __name__ == "__main__":
    # Small ViT-ish shapes: batch=2, seq=8, hidden=32 (padded to 128 lanes internally).
    B, S, H = 2, 8, 32
    key = jax.random.PRNGKey(0)
    kx, kw, kb = jax.random.split(key, 3)

    x = jax.random.normal(kx, (B, S, H), dtype=jnp.float32)
    # Deterministic params for the inner Linear layer of the Sequential.
    w = jax.random.normal(kw, (H, H), dtype=jnp.float32) * 0.02
    b = jax.random.normal(kb, (H,), dtype=jnp.float32) * 0.02
    # Module init: gamma = zeros(1)  (faithful to nn.Parameter(torch.zeros(1))).
    gamma = jnp.zeros((), dtype=jnp.float32)
    # TODO(synk): the generic *layers Sequential has no single Pallas equivalent;
    # this script fixes it to one Linear layer fused into the kernel.

    def reference(x, w, b, gamma):
        y = jnp.dot(x.reshape(-1, x.shape[-1]), w, precision="highest") + b
        return x + gamma * y.reshape(x.shape)

    # gamma = 0 path (module init): forward(x) == x exactly.
    out = residual_forward(x, w, b, gamma)
    jax.block_until_ready(out)
    assert jnp.allclose(out, reference(x, w, b, gamma), atol=1e-5, rtol=1e-5)

    # Nonzero gamma so the fused matmul / bias / scale / residual branch is exercised.
    gamma2 = jnp.float32(0.7)
    out2 = residual_forward(x, w, b, gamma2)
    jax.block_until_ready(out2)
    assert jnp.allclose(out2, reference(x, w, b, gamma2), atol=5e-3, rtol=5e-3)

    # Exercise the K-tiled fallback path (normally used when W cannot stay VMEM-resident).
    H2 = 256
    kx2, kw2, kb2 = jax.random.split(jax.random.PRNGKey(1), 3)
    x3 = jax.random.normal(kx2, (B, S, H2), dtype=jnp.float32)
    w3 = jax.random.normal(kw2, (H2, H2), dtype=jnp.float32) * 0.02
    b3 = jax.random.normal(kb2, (H2,), dtype=jnp.float32) * 0.02
    out3 = residual_forward(x3, w3, b3, gamma2, force_tiled=True)
    jax.block_until_ready(out3)
    assert jnp.allclose(out3, reference(x3, w3, b3, gamma2), atol=5e-3, rtol=5e-3)

    print("KERNEL_OK")
</pallas_src>

<mosaic_0001>
module attributes {stable_mosaic.version = 11 : i64} {
  func.func @residual_linear_kernel(%arg0: i32, %arg1: memref<1xf32, #tpu.memory_space<smem>>, %arg2: memref<8x128xf32, #tpu.memory_space<vmem>>, %arg3: memref<128x128xf32, #tpu.memory_space<vmem>>, %arg4: memref<1x128xf32, #tpu.memory_space<vmem>>, %arg5: memref<8x128xf32, #tpu.memory_space<vmem>>) attributes {dimension_semantics = [#tpu.dimension_semantics<parallel>], iteration_bounds = array<i64: 2>, scalar_prefetch = 0 : i64, scratch_operands = 0 : i64, tpu.core_type = #tpu.core_type<tc>, window_params = [{transform_indices = @transform_0, window_bounds = array<i64: 1>}, {transform_indices = @transform_1, window_bounds = array<i64: 8, 128>}, {pipeline_mode = #tpu.pipeline_mode<synchronous>, transform_indices = @transform_2, window_bounds = array<i64: 128, 128>}, {pipeline_mode = #tpu.pipeline_mode<synchronous>, transform_indices = @transform_3, window_bounds = array<i64: 1, 128>}, {transform_indices = @transform_4, window_bounds = array<i64: 8, 128>}]} {
    %c0 = arith.constant 0 : index
    %c0_0 = arith.constant 0 : index
    %0 = vector.load %arg2[%c0, %c0_0] : memref<8x128xf32, #tpu.memory_space<vmem>>, vector<8x128xf32>
    %c0_1 = arith.constant 0 : index
    %c0_2 = arith.constant 0 : index
    %1 = vector.load %arg3[%c0_1, %c0_2] : memref<128x128xf32, #tpu.memory_space<vmem>>, vector<128x128xf32>
    %cst = arith.constant dense<0.000000e+00> : vector<8x128xf32>
    %2 = tpu.matmul %0, %1, %cst {dimension_numbers = #tpu.dot_dimension_numbers<[1], [0], [0], [1], [0, 0, 1, 1], [], []>} : vector<8x128xf32>, vector<128x128xf32>, vector<8x128xf32> -> vector<8x128xf32>
    %c0_3 = arith.constant 0 : index
    %c0_4 = arith.constant 0 : index
    %3 = vector.load %arg4[%c0_3, %c0_4] : memref<1x128xf32, #tpu.memory_space<vmem>>, vector<1x128xf32>
    %4 = vector.broadcast %3 : vector<1x128xf32> to vector<8x128xf32>
    %5 = arith.addf %2, %4 : vector<8x128xf32>
    %c0_5 = arith.constant 0 : index
    %6 = memref.load %arg1[%c0_5] : memref<1xf32, #tpu.memory_space<smem>>
    %7 = vector.broadcast %6 : f32 to vector<8x128xf32>
    %8 = arith.mulf %7, %5 : vector<8x128xf32>
    %9 = arith.addf %0, %8 : vector<8x128xf32>
    %c0_6 = arith.constant 0 : index
    %c0_7 = arith.constant 0 : index
    %10 = vector.load %arg5[%c0_6, %c0_7] : memref<8x128xf32, #tpu.memory_space<vmem>>, vector<8x128xf32>
    tpu.vector_store %arg5[%c0_6, %c0_7], %9 {strides = array<i32>} : memref<8x128xf32, #tpu.memory_space<vmem>>, vector<8x128xf32>,
    return
  }
  func.func @transform_0(%arg0: i32) -> i32 {
    %c0_i32 = arith.constant 0 : i32
    %c0_i32_0 = arith.constant 0 : i32
    return %c0_i32 : i32
  }
  func.func @transform_1(%arg0: i32) -> (i32, i32) {
    %c0_i32 = arith.constant 0 : i32
    %c0_i32_0 = arith.constant 0 : i32
    return %arg0, %c0_i32 : i32, i32
  }
  func.func @transform_2(%arg0: i32) -> (i32, i32) {
    %c0_i32 = arith.constant 0 : i32
    %c0_i32_0 = arith.constant 0 : i32
    %c0_i32_1 = arith.constant 0 : i32
    return %c0_i32, %c0_i32_0 : i32, i32
  }
  func.func @transform_3(%arg0: i32) -> (i32, i32) {
    %c0_i32 = arith.constant 0 : i32
    %c0_i32_0 = arith.constant 0 : i32
    %c0_i32_1 = arith.constant 0 : i32
    return %c0_i32, %c0_i32_0 : i32, i32
  }
  func.func @transform_4(%arg0: i32) -> (i32, i32) {
    %c0_i32 = arith.constant 0 : i32
    %c0_i32_0 = arith.constant 0 : i32
    return %arg0, %c0_i32 : i32, i32
  }
}

</mosaic_0001>

<bundles_post_ra>
// kernel: residual_forward.1
= control target key start
LH: loop header
LB: loop body
LE: loop exit
PB: predicated region body
PF: predicated region fallthrough
CT: control target
= control target key end

     0   :  { %s456_s17 = smov 0   ;;  %s531_s0 = inlined_call_operand.<no memory space> [shape: f32[1], index: 0, kind: input, shape index: {}]   ;;  %s532_s1 = inlined_call_operand.vmem [shape: f32[16,128], index: 1, kind: input, shape index: {}, may-alias: {1,4}]   ;;  %s533_s2 = inlined_call_operand.vmem [shape: f32[128,128], index: 2, kind: input, shape index: {}]   ;;  %s534_s3 = inlined_call_operand.vmem [shape: f32[1,128], index: 3, kind: input, shape index: {}]   ;;  %s535_s4 = inlined_call_operand.vmem [shape: f32[16,128], index: 4, kind: output, shape index: {}, may-alias: {1,4}]  }
   0x1   :  { %9 = sst [smem:[#allocation2]] %s531_s0 }
   0x2 LB: > { %s346_s18 = sadd.s32 4294967295, %s424_s17   ;;  %p350_p0 = scmp.ge.s32.totalorder %s424_s17, 1  ;;  %s424_s17 = sphi %s456_s17, %s15_s17  }
   0x3   : > { %p162_p1 = scmp.lt.s32.totalorder %s424_s17, 3 }
   0x5   : > { %p163_p2 = pnand %p350_p0, %p162_p1 }
   0x6   : > { %p186_p3 = scmp.lt.s32.totalorder (!%p163_p2), %s346_s18, 1 }
   0x7   : > { %166 = sbr.rel (%p163_p2) target bundleno = 245 (0xf5), region = 36 }
   0xc   : > { %v210_v0 = vld [vmem:[%s533_s2 + $0x78] sm:$0xff]  ;;  %v426_v1 = vmov 0.0   ;;  %v209_v2 = vld [vmem:[%s533_s2 + $0x70] sm:$0xff]  ;;  %vm427_vm0 = vmmov 0   ;;  %v208_v3 = vld [vmem:[%s533_s2 + $0x68] sm:$0xff]  ;;  %s537_s18 = smov (!%p186_p3, %s346_s18), 1 }
   0xd   : > { %373 = vmatprep.subr.mxu0 %v426_v1  ;;  %405 = vmatprep.mubr.msk.f32.mxu0 %vm427_vm0, %v426_v1  ;;  %v207_v4 = vld [vmem:[%s533_s2 + $0x60] sm:$0xff]  ;;  %v206_v5 = vld [vmem:[%s533_s2 + $0x58] sm:$0xff]  ;;  %v205_v6 = vld [vmem:[%s533_s2 + $0x50] sm:$0xff]  ;;  %s351_s20 = sshll.u32 %s537_s18, 3  ;;  %s288_s18 = sld [smem:[#allocation2]] }
   0xe   : > { %374 = vmatpush3.msra.mxu0 %v210_v0  ;;  %v204_v7 = vld [vmem:[%s533_s2 + $0x48] sm:$0xff]  ;;  %v203_v8 = vld [vmem:[%s533_s2 + $0x40] sm:$0xff]  ;;  %v202_v9 = vld [vmem:[%s533_s2 + $0x38] sm:$0xff]  ;;  %s189_s26 = scalar_lea.vmem %s532_s1, %s351_s20  ;;  %s193_s7 = scalar_lea.vmem %s535_s4, %s351_s20 }
   0xf   : > { %375 = vmatprep.subr.mxu0 %v426_v1  ;;  %v201_v10 = vld [vmem:[%s533_s2 + $0x30] sm:$0xff]  ;;  %v200_v11 = vld [vmem:[%s533_s2 + $0x28] sm:$0xff]  ;;  %v199_v12 = vld [vmem:[%s533_s2 + $0x20] sm:$0xff] }
  0x10   : > { %376 = vmatpush3.msra.mxu0 %v209_v2  ;;  %v198_v13 = vld [vmem:[%s533_s2 + $0x18] sm:$0xff]  ;;  %v197_v14 = vld [vmem:[%s533_s2 + $0x10] sm:$0xff]  ;;  %v196_v15 = vld [vmem:[%s533_s2 + $0x8] sm:$0xff] }
  0x11   : > { %377 = vmatprep.subr.mxu0 %v426_v1  ;;  %v195_v16 = vld [vmem:[%s533_s2] sm:$0xff] }
  0x12   : > { %378 = vmatpush3.msra.mxu0 %v208_v3  ;;  %v194_v17 = vld [vmem:[%s189_s26] sm:$0xff] }
  0x13   : > { %379 = vmatprep.subr.mxu0 %v426_v1  ;;  %v353_v18 = vld [vmem:[%s534_s3] ss:$0 sm:$0xff]  ;;  %v289_v20 = vstv %s288_s18 }
  0x14   : > { %380 = vmatpush3.msra.mxu0 %v207_v4 }
  0x15   : > { %381 = vmatprep.subr.mxu0 %v426_v1 }
  0x16   : > { %382 = vmatpush3.msra.mxu0 %v206_v5 }
  0x17   : > { %383 = vmatprep.subr.mxu0 %v426_v1 }
  0x18   : > { %384 = vmatpush3.msra.mxu0 %v205_v6 }
  0x19   : > { %385 = vmatprep.subr.mxu0 %v426_v1 }
  0x1a   : > { %386 = vmatpush3.msra.mxu0 %v204_v7 }
  0x1b   : > { %387 = vmatprep.subr.mxu0 %v426_v1 }
  0x1c   : > { %388 = vmatpush3.msra.mxu0 %v203_v8 }
  0x1d   : > { %389 = vmatprep.subr.mxu0 %v426_v1 }
  0x1e   : > { %390 = vmatpush3.msra.mxu0 %v202_v9 }
  0x1f   : > { %391 = vmatprep.subr.mxu0 %v426_v1 }
  0x20   : > { %392 = vmatpush3.msra.mxu0 %v201_v10 }
  0x21   : > { %393 = vmatprep.subr.mxu0 %v426_v1 }
  0x22   : > { %394 = vmatpush3.msra.mxu0 %v200_v11 }
  0x23   : > { %395 = vmatprep.subr.mxu0 %v426_v1 }
  0x24   : > { %396 = vmatpush3.msra.mxu0 %v199_v12 }
  0x25   : > { %397 = vmatprep.subr.mxu0 %v426_v1 }
  0x26   : > { %398 = vmatpush3.msra.mxu0 %v198_v13 }
  0x27   : > { %399 = vmatprep.subr.mxu0 %v426_v1 }
  0x28   : > { %400 = vmatpush3.msra.mxu0 %v197_v14 }
  0x29   : > { %401 = vmatprep.subr.mxu0 %v426_v1 }
  0x2a   : > { %402 = vmatpush3.msra.mxu0 %v196_v15 }
  0x2b   : > { %403 = vmatprep.subr.mxu0 %v426_v1 }
  0x2c   : > { %404 = vmatpush3.msra.mxu0 %v195_v16 }
  0x2d   : > { %406 = vmatmul.mubr.f32.vlgmr.msra.gmra.mxu0 %v194_v17 }
  0xed   : > { %v284_v19 = vpop.f32.mrf.mxu0 }
  0xee   : > { %v285_v21 = vadd.f32 %v353_v18, %v284_v19 }
  0xef   : > { %v407_v22 = vpop.f32.mrf.mxu0 }
  0xf0   : > { %v290_v23 = vmul.f32 %v289_v20, %v285_v21 }
  0xf2   : > { %v291_v24 = vadd.f32 %v290_v23, %v194_v17 }
  0xf4   : > { %292 = vst [vmem:[%s193_s7] sm:$0xff] %v291_v24 }
  0xf5 PF: > { %s15_s17 = sadd.s32 1, %s424_s17  }
  0xf6   : > { %p12_p4 = scmp.ge.s32.totalorder %s15_s17, 4  }
  0xf8   :  { %14 = sbr.rel (!%p12_p4) target bundleno = 2 (0x2), region = 66 }

</bundles_post_ra>
